<compile_context>
chip_gen: v7x
topology: tpu7x:2x2x1
jax: 0.10.0
libtpu: 0.0.40
codegen_flags: <defaults>
</compile_context>

<pallas_src>
import functools

import jax
import jax.numpy as jnp
from jax.experimental import pallas as pl
from jax.experimental.pallas import tpu as pltpu

LANE = 128
_MIB = 1024 * 1024


def _round_up(x: int, m: int) -> int:
    return ((x + m - 1) // m) * m


def _cdiv(a: int, b: int) -> int:
    return -(-a // b)


def _vmem_budget_bytes() -> int:
    """Generation-aware scoped-VMEM limit (v5e/v6e: 128 MiB physical, v7x: 64 MiB)."""
    try:
        cap = int(getattr(pltpu.get_tpu_info(), "vmem_capacity_bytes", 0)) or 64 * _MIB
    except Exception:
        cap = 64 * _MIB  # conservative (v7x)
    return min(100 * _MIB, (cap * 3) // 4)


# ----------------------------- kernels ---------------------------------------


def _mlp_kernel_resident(x_ref, w1_ref, w2_ref, o_ref, z2_ref):
    # z2 scratch keeps the (tm, hid_p) intermediate in VMEM (not vregs -> no spills).
    z2_ref[...] = jax.nn.sigmoid(
        jnp.dot(x_ref[...], w1_ref[...], preferred_element_type=jnp.float32))
    z3 = jnp.dot(z2_ref[...].astype(jnp.bfloat16), w2_ref[...],
                 preferred_element_type=jnp.float32)
    o_ref[...] = jax.nn.sigmoid(z3).astype(o_ref.dtype)


def _mlp_kernel_hidden_tiled(x_ref, w1_ref, w2_ref, o_ref, acc_ref):
    # Hidden dim tiled (axis 1, "arbitrary"); accumulate second matmul in f32 scratch.
    h = pl.program_id(1)

    @pl.when(h == 0)
    def _():
        acc_ref[...] = jnp.zeros_like(acc_ref)

    z = jnp.dot(x_ref[...], w1_ref[...], preferred_element_type=jnp.float32)
    z2 = jax.nn.sigmoid(z).astype(jnp.bfloat16)
    acc_ref[...] += jnp.dot(z2, w2_ref[...], preferred_element_type=jnp.float32)

    @pl.when(h == pl.num_programs(1) - 1)
    def _():
        o_ref[...] = jax.nn.sigmoid(acc_ref[...]).astype(o_ref.dtype)


# ----------------------------- wrappers ---------------------------------------


def prepare_weights(w1, w2):
    """One-time pad (lane-dense) + bf16 cast of the weights, hoisted out of forward.

    Padded hidden columns produce sigmoid(0)=0.5 but multiply zero-padded W2 rows,
    so they contribute nothing; padded output columns are sliced off by the caller.
    """
    in_f, hidden = w1.shape
    hidden2, out_f = w2.shape
    assert hidden == hidden2
    hid_p = _round_up(max(hidden, 1), LANE)
    out_p = _round_up(max(out_f, 1), LANE)
    bf16 = jnp.bfloat16
    w1p = jnp.zeros((in_f, hid_p), bf16).at[:, :hidden].set(w1.astype(bf16))
    w2p = jnp.zeros((hid_p, out_p), bf16).at[:hidden, :out_f].set(w2.astype(bf16))
    return w1p, w2p


@functools.partial(
    jax.jit, static_argnames=("out_f", "block_batch", "max_resident_weight_bytes"))
def neural_network_forward(x, w1p, w2p, *, out_f, block_batch=None,
                           max_resident_weight_bytes=None):
    """Pallas equivalent of Neural_Network.forward: sigmoid(sigmoid(X@W1)@W2).

    `w1p`, `w2p` must come from prepare_weights (bf16, hidden/out padded to 128).
    """
    batch, in_f = x.shape
    in_f2, hid_p = w1p.shape
    hid_p2, out_p = w2p.shape
    assert in_f == in_f2 and hid_p == hid_p2

    vmem_limit = _vmem_budget_bytes()
    if block_batch is None:
        # Bigger tiles on the 128 MiB parts (v5e/v6e), smaller on v7x (64 MiB).
        block_batch = 1024 if vmem_limit >= 72 * _MIB else 512

    f32 = jnp.float32
    xb = x.astype(jnp.bfloat16)  # bf16-native MXU on all three generations

    weight_bytes = 2 * (in_f * hid_p + hid_p * out_p)

    def act_bytes(tm):
        # double-buffered x + out tiles, plus the single z2 f32 scratch
        return 2 * tm * in_f * 2 + 2 * tm * out_p * 4 + tm * hid_p * 4

    # Batch tile: balanced tiles; even tile count so v7x's 2 TensorCores stay busy.
    if batch <= block_batch:
        tm = _round_up(batch, 16)
    else:
        num_tiles = _cdiv(batch, block_batch)
        if num_tiles % 2:
            num_tiles += 1
        tm = _round_up(_cdiv(batch, num_tiles), 16)

    budget = int(vmem_limit * 0.8)
    weight_budget = budget if max_resident_weight_bytes is None else max_resident_weight_bytes
    while weight_bytes + act_bytes(tm) > budget and tm > 64:
        tm = max(64, _round_up(tm // 2, 16))
    grid_m = _cdiv(batch, tm)

    cost = pl.CostEstimate(
        flops=2 * batch * (in_f * hid_p + hid_p * out_p),
        transcendentals=batch * (hid_p + out_p),
        bytes_accessed=batch * in_f * 2 + weight_bytes + batch * out_p * 4,
    )
    out_shape = jax.ShapeDtypeStruct((batch, out_p), f32)

    resident_fits = (weight_bytes <= weight_budget
                     and weight_bytes + act_bytes(tm) <= budget)

    if resident_fits and grid_m == 1:
        # Tiny single-tile problem: no grid / pipeline scaffolding, everything in VMEM.
        out_padded = pl.pallas_call(
            _mlp_kernel_resident,
            out_shape=out_shape,
            in_specs=[pl.BlockSpec(memory_space=pltpu.MemorySpace.VMEM)] * 3,
            out_specs=pl.BlockSpec(memory_space=pltpu.MemorySpace.VMEM),
            scratch_shapes=[pltpu.VMEM((batch, hid_p), f32)],
            compiler_params=pltpu.CompilerParams(vmem_limit_bytes=vmem_limit),
            cost_estimate=cost,
        )(xb, w1p, w2p)
    elif resident_fits:
        # Stream batch tiles; W1/W2 stay VMEM-resident across all tiles.
        out_padded = pl.pallas_call(
            _mlp_kernel_resident,
            out_shape=out_shape,
            grid=(grid_m,),
            in_specs=[
                pl.BlockSpec((tm, in_f), lambda i: (i, 0)),
                pl.BlockSpec((in_f, hid_p), lambda i: (0, 0)),   # resident
                pl.BlockSpec((hid_p, out_p), lambda i: (0, 0)),  # resident
            ],
            out_specs=pl.BlockSpec((tm, out_p), lambda i: (i, 0)),
            scratch_shapes=[pltpu.VMEM((tm, hid_p), f32)],
            compiler_params=pltpu.CompilerParams(
                dimension_semantics=("parallel",),  # v7x: shard batch over both TCs
                vmem_limit_bytes=vmem_limit,
            ),
            cost_estimate=cost,
        )(xb, w1p, w2p)
    else:
        # Weights too big to keep resident (e.g. v7x's 64 MiB VMEM): tile the hidden dim
        # (N of the first matmul / K of the second) and accumulate in f32 scratch.
        th = hid_p

        def tiled_bytes(tm_, th_):
            return (2 * (in_f * th_ * 2 + th_ * out_p * 2)       # dbl-buffered weight tiles
                    + 2 * tm_ * in_f * 2 + 2 * tm_ * out_p * 4   # dbl-buffered x / out
                    + tm_ * out_p * 4)                           # accumulator scratch

        while th > LANE and (tiled_bytes(tm, th) > budget
                             or 2 * (in_f * th + th * out_p) > weight_budget):
            th = max(LANE, _round_up(th // 2, LANE))
        while tiled_bytes(tm, th) > budget and tm > 64:
            tm = max(64, _round_up(tm // 2, 16))
        grid_m = _cdiv(batch, tm)
        grid_h = _cdiv(hid_p, th)

        out_padded = pl.pallas_call(
            _mlp_kernel_hidden_tiled,
            out_shape=out_shape,
            grid=(grid_m, grid_h),
            in_specs=[
                pl.BlockSpec((tm, in_f), lambda i, h: (i, 0)),
                pl.BlockSpec((in_f, th), lambda i, h: (0, h)),
                pl.BlockSpec((th, out_p), lambda i, h: (h, 0)),
            ],
            out_specs=pl.BlockSpec((tm, out_p), lambda i, h: (i, 0)),
            scratch_shapes=[pltpu.VMEM((tm, out_p), f32)],
            compiler_params=pltpu.CompilerParams(
                dimension_semantics=("parallel", "arbitrary"),
                vmem_limit_bytes=vmem_limit,
            ),
            cost_estimate=cost,
        )(xb, w1p, w2p)

    return out_padded[:, :out_f]


def reference_forward(x, w1, w2):
    """Plain-JAX f32 reference for correctness check."""
    z2 = jax.nn.sigmoid(x.astype(jnp.float32) @ w1.astype(jnp.float32))
    return jax.nn.sigmoid(z2 @ w2.astype(jnp.float32))


if __name__ == "__main__":
    # Shapes implied by the module: X:[batch, inputsize], W1:[inputsize, hiddensize],
    # W2:[hiddensize, outputsize].
    batch, inputsize, hiddensize, outputsize = 8, 16, 32, 8

    key = jax.random.PRNGKey(0)
    kx, k1, k2 = jax.random.split(key, 3)
    x = jax.random.normal(kx, (batch, inputsize), dtype=jnp.float32)
    w1 = jax.random.normal(k1, (inputsize, hiddensize), dtype=jnp.float32)
    w2 = jax.random.normal(k2, (hiddensize, outputsize), dtype=jnp.float32)

    # One-time weight preparation (padding/cast hoisted out of the per-call path).
    w1p, w2p = prepare_weights(w1, w2)

    TOL = 5e-2  # bf16 matmul inputs are an intentional precision change vs f64

    # 1) Tiny single-tile (gridless) path.
    out = jax.block_until_ready(neural_network_forward(x, w1p, w2p, out_f=outputsize))
    ref = reference_forward(x, w1, w2)
    assert out.shape == (batch, outputsize)
    assert jnp.allclose(out, ref, atol=TOL), "mismatch vs reference (single-tile)"

    # 2) Batch-tiled resident-weight path (partial last tile: 200 rows, tm=64).
    batch2 = 200
    x2 = jax.random.normal(jax.random.PRNGKey(1), (batch2, inputsize), dtype=jnp.float32)
    out2 = jax.block_until_ready(
        neural_network_forward(x2, w1p, w2p, out_f=outputsize, block_batch=64))
    assert out2.shape == (batch2, outputsize)
    assert jnp.allclose(out2, reference_forward(x2, w1, w2), atol=TOL), \
        "mismatch vs reference (batch-tiled)"

    # 3) Hidden-tiled fallback path (what v7x uses when weights don't fit 64 MiB VMEM);
    #    forced here with a tiny resident-weight budget so the accumulator path runs.
    hidden3 = 200
    w1b = jax.random.normal(jax.random.PRNGKey(2), (inputsize, hidden3), dtype=jnp.float32)
    w2b = jax.random.normal(jax.random.PRNGKey(3), (hidden3, outputsize), dtype=jnp.float32)
    w1bp, w2bp = prepare_weights(w1b, w2b)
    out3 = jax.block_until_ready(
        neural_network_forward(x2, w1bp, w2bp, out_f=outputsize,
                               block_batch=64, max_resident_weight_bytes=1))
    assert out3.shape == (batch2, outputsize)
    assert jnp.allclose(out3, reference_forward(x2, w1b, w2b), atol=TOL), \
        "mismatch vs reference (hidden-tiled)"

    # TODO(synk): backward/train/ce_loss/predict/saveWeights are host-side training-loop
    # methods, not part of the forward pass; not implemented as kernels.
    print("KERNEL_OK")
</pallas_src>

<mosaic_0001>
module attributes {stable_mosaic.version = 11 : i64} {
  func.func @_mlp_kernel_resident(%arg0: memref<8x16xbf16, #tpu.memory_space<vmem>>, %arg1: memref<16x128xbf16, #tpu.memory_space<vmem>>, %arg2: memref<128x128xbf16, #tpu.memory_space<vmem>>, %arg3: memref<8x128xf32, #tpu.memory_space<vmem>>, %arg4: memref<8x128xf32, #tpu.memory_space<vmem>>) attributes {dimension_semantics = [], scalar_prefetch = 0 : i64, scratch_operands = 1 : i64, tpu.core_type = #tpu.core_type<tc>} {
    %c0 = arith.constant 0 : index
    %c0_0 = arith.constant 0 : index
    %0 = vector.load %arg0[%c0, %c0_0] : memref<8x16xbf16, #tpu.memory_space<vmem>>, vector<8x16xbf16>
    %c0_1 = arith.constant 0 : index
    %c0_2 = arith.constant 0 : index
    %1 = vector.load %arg1[%c0_1, %c0_2] : memref<16x128xbf16, #tpu.memory_space<vmem>>, vector<16x128xbf16>
    %cst = arith.constant dense<0.000000e+00> : vector<8x128xf32>
    %2 = tpu.matmul %0, %1, %cst {dimension_numbers = #tpu.dot_dimension_numbers<[1], [0], [0], [1], [0, 0, 1, 1], [], []>} : vector<8x16xbf16>, vector<16x128xbf16>, vector<8x128xf32> -> vector<8x128xf32>
    %3 = arith.negf %2 : vector<8x128xf32>
    %4 = math.exp %3 : vector<8x128xf32>
    %cst_3 = arith.constant 1.000000e+00 : f32
    %5 = vector.broadcast %cst_3 : f32 to vector<8x128xf32>
    %6 = arith.addf %5, %4 : vector<8x128xf32>
    %7 = arith.divf %5, %6 : vector<8x128xf32>
    %c0_4 = arith.constant 0 : index
    %c0_5 = arith.constant 0 : index
    %8 = vector.load %arg4[%c0_4, %c0_5] : memref<8x128xf32, #tpu.memory_space<vmem>>, vector<8x128xf32>
    tpu.vector_store %arg4[%c0_4, %c0_5], %7 {strides = array<i32>} : memref<8x128xf32, #tpu.memory_space<vmem>>, vector<8x128xf32>,
    %c0_6 = arith.constant 0 : index
    %c0_7 = arith.constant 0 : index
    %9 = vector.load %arg4[%c0_6, %c0_7] : memref<8x128xf32, #tpu.memory_space<vmem>>, vector<8x128xf32>
    %10 = arith.truncf %9 : vector<8x128xf32> to vector<8x128xbf16>
    %c0_8 = arith.constant 0 : index
    %c0_9 = arith.constant 0 : index
    %11 = vector.load %arg2[%c0_8, %c0_9] : memref<128x128xbf16, #tpu.memory_space<vmem>>, vector<128x128xbf16>
    %cst_10 = arith.constant dense<0.000000e+00> : vector<8x128xf32>
    %12 = tpu.matmul %10, %11, %cst_10 {dimension_numbers = #tpu.dot_dimension_numbers<[1], [0], [0], [1], [0, 0, 1, 1], [], []>} : vector<8x128xbf16>, vector<128x128xbf16>, vector<8x128xf32> -> vector<8x128xf32>
    %13 = arith.negf %12 : vector<8x128xf32>
    %14 = math.exp %13 : vector<8x128xf32>
    %cst_11 = arith.constant 1.000000e+00 : f32
    %15 = vector.broadcast %cst_11 : f32 to vector<8x128xf32>
    %16 = arith.addf %15, %14 : vector<8x128xf32>
    %17 = arith.divf %15, %16 : vector<8x128xf32>
    %c0_12 = arith.constant 0 : index
    %c0_13 = arith.constant 0 : index
    %18 = vector.load %arg3[%c0_12, %c0_13] : memref<8x128xf32, #tpu.memory_space<vmem>>, vector<8x128xf32>
    tpu.vector_store %arg3[%c0_12, %c0_13], %17 {strides = array<i32>} : memref<8x128xf32, #tpu.memory_space<vmem>>, vector<8x128xf32>,
    return
  }
}

</mosaic_0001>

<bundles_post_ra>
// kernel: neural_network_forward.1
= control target key start
LH: loop header
LB: loop body
LE: loop exit
PB: predicated region body
PF: predicated region fallthrough
CT: control target
= control target key end

     0   :  { %8 = vsyncpa [#allocation4], 0  ;;  %s394_s0 = inlined_call_operand.vmem [shape: bf16[8,16], index: 0, kind: input, shape index: {}]   ;;  %s395_s1 = inlined_call_operand.vmem [shape: bf16[16,128], index: 1, kind: input, shape index: {}]   ;;  %s396_s2 = inlined_call_operand.hbm [shape: bf16[128,128], index: 2, kind: input, shape index: {}]   ;;  %s397_s3 = inlined_call_operand.hbm [shape: f32[8,128], index: 3, kind: output, shape index: {}]  }
   0x1   :  { %9 = vsyncpa [#allocation5], 0  ;;  %s338_s12 = smov [#allocation3]   ;;  %s290_s16 = scalar_lea.hbm %s396_s2, 1024 }
   0x2   :  { %s19_s13 = sshll.u32 %s338_s12, 4  ;;  %p291_p0 = scmp.ne.s32.totalorder %s396_s2, %s290_s16  ;;  %s20_s13 = int_to_ptr.vmem [resolvable:$true] %s19_s13 }
   0x3   :  { %p294_p1 = scmp.lt.u32.totalorder %s290_s16, %s396_s2 }
   0x5   :  { %p296_p2 = pnand %p294_p1, %p291_p0 }
   0x7   :  { %299 = shalt.err (!%p296_p2)
}
   0x8   :  { %s300_s21 = scalar_lea.vmem %s20_s13, 1024  ;;  %p305_p4 = scmp.lt.s32.totalorder %s20_s13, %s20_s13 }
   0x9   :  { %p301_p3 = scmp.ne.s32.totalorder %s20_s13, %s300_s21  ;;  %p306_p5 = scmp.lt.s32.totalorder %s300_s21, %s300_s21 }
   0xb   :  { %p307_p6 = por %p306_p5, %p305_p4 }
   0xd   :  { %p308_p7 = pnand %p307_p6, %p301_p3 }
   0xf   :  { %311 = shalt.err (!%p308_p7)
}
  0x10   :  { %s339_s22 = smov 64   ;;  %s340_s23 = smov 4  }
  0x11   :  { %25 = dma.hbm_to_vmem [thread:$0]  %s396_s2, 1024, %s20_s13, [#allocation4], %s339_s22, %s339_s22, %s340_s23  }
  0x12   :  { %334 = dma.done.wait [#allocation4], 1024  }
  0x13   :  { %335 = vsyncadd [#allocation4], 4294966272  ;;  %v341_v0 = vmov 0.0   ;;  %vm342_vm0 = vmmov 0   ;;  %v273_v1 = vld [vmem:[%s395_s1] sm:$0xff]   ;;  %vm39_vm1 = vcmask 130048  }
  0x14   :  { %241 = vmatprep.subr.bf16.mxu0 %v341_v0  ;;  %243 = vmatprep.mubr.msk.bf16.mxu0 %vm342_vm0, %v341_v0  ;;  %v30_v2 = vld [vmem:[%s394_s0] sm:$0xf]  ;;  %v275_v4 = vld [vmem:[#allocation3 + $0x8] sm:$0xff]   ;;  %v276_v5 = vld [vmem:[#allocation3 + $0x10] sm:$0xff]   ;;  %s343_s0 = smov [#allocation6]  }
  0x15   :  { %247 = vmatprep.subr.bf16.mxu1 %v341_v0  ;;  %263 = vmatprep.mubr.msk.bf16.mxu1 %vm342_vm0, %v341_v0  ;;  %v274_v3 = vld [vmem:[#allocation3] sm:$0xff]   ;;  %v277_v6 = vld [vmem:[#allocation3 + $0x18] sm:$0xff]   ;;  %v279_v8 = vld [vmem:[#allocation3 + $0x28] sm:$0xff]   ;;  %s209_s1 = sshll.u32 %s343_s0, 4  ;;  %s210_s1 = int_to_ptr.vmem [resolvable:$true] %s209_s1 }
  0x16   :  { %242 = vmatpush3.bf16.msra.mxu0 %v273_v1  ;;  %248 = vmatpush3.bf16.msra.mxu1 %v274_v3  ;;  %v278_v7 = vld [vmem:[#allocation3 + $0x20] sm:$0xff]   ;;  %v280_v9 = vld [vmem:[#allocation3 + $0x30] sm:$0xff]   ;;  %v281_v10 = vld [vmem:[#allocation3 + $0x38] sm:$0xff]   ;;  %s312_s2 = scalar_lea.vmem %s210_s1, 128  ;;  %p317_p9 = scmp.lt.s32.totalorder %s210_s1, %s210_s1 }
  0x17   :  { %249 = vmatprep.subr.bf16.mxu1 %v341_v0  ;;  %p313_p8 = scmp.ne.s32.totalorder %s210_s1, %s312_s2  ;;  %p318_p10 = scmp.lt.s32.totalorder %s312_s2, %s312_s2 }
  0x19   :  { %244 = vmatmul.mubr.msk.bf16.vlgmr.msra.gmra.mrb[0].mxu0 %vm39_vm1, %v30_v2  ;;  %p319_p11 = por %p318_p10, %p317_p9 }
  0x1a   :  { %250 = vmatpush3.bf16.msra.mxu1 %v275_v4 }
  0x1b   :  { %251 = vmatprep.subr.bf16.mxu1 %v341_v0  ;;  %p320_p12 = pnand %p319_p11, %p313_p8 }
  0x1e   :  { %252 = vmatpush3.bf16.msra.mxu1 %v276_v5 }
  0x1f   :  { %253 = vmatprep.subr.bf16.mxu1 %v341_v0 }
  0x22   :  { %254 = vmatpush3.bf16.msra.mxu1 %v277_v6 }
  0x23   :  { %255 = vmatprep.subr.bf16.mxu1 %v341_v0 }
  0x26   :  { %256 = vmatpush3.bf16.msra.mxu1 %v278_v7 }
  0x27   :  { %257 = vmatprep.subr.bf16.mxu1 %v341_v0 }
  0x2a   :  { %258 = vmatpush3.bf16.msra.mxu1 %v279_v8 }
  0x2b   :  { %259 = vmatprep.subr.bf16.mxu1 %v341_v0 }
  0x2e   :  { %260 = vmatpush3.bf16.msra.mxu1 %v280_v9 }
  0x2f   :  { %261 = vmatprep.subr.bf16.mxu1 %v341_v0 }
  0x32   :  { %262 = vmatpush3.bf16.msra.mxu1 %v281_v10 }
  0xec   :  { %v77_v11 = vpop.f32.mrb[0].mxu0 }
  0xed   :  { %v220_v12 = vmul.f32 -1.442695, %v77_v11  ;;  %v245_v13 = vpop.f32.mrb[1].mxu0 }
  0xee   :  { %v80_v14 = vpop.f32.mrb[2].mxu0 }
  0xef   :  { %282 = vpow2.f32 %v220_v12  ;;  %v246_v15 = vpop.f32.mrb[3].mxu0 }
  0xf9   :  { %v283_v16 = vpop.eup %282 }
  0xfa   :  { %v86_v17 = vadd.f32 1.0, %v283_v16 }
  0xfc   :  { %284 = vrcp.f32 %v86_v17 }
 0x106   :  { %v285_v18 = vpop.eup %284 }
 0x107   :  { %v91_v19 = vpack.c.bf16 %v285_v18, %v285_v18 }
 0x109   :  { %264 = vmatmul.mubr.bf16.vlgmr.msra.gmra.mrb[0].mxu1 %v91_v19 }
 0x1dc   :  { %v190_v20 = vpop.f32.mrb[0].mxu1 }
 0x1dd   :  { %v229_v21 = vmul.f32 -1.442695, %v190_v20  ;;  %v265_v22 = vpop.f32.mrb[1].mxu1 }
 0x1de   :  { %v193_v23 = vpop.f32.mrb[2].mxu1 }
 0x1df   :  { %286 = vpow2.f32 %v229_v21  ;;  %v266_v24 = vpop.f32.mrb[3].mxu1 }
 0x1e9   :  { %v287_v25 = vpop.eup %286 }
 0x1ea   :  { %v199_v26 = vadd.f32 1.0, %v287_v25 }
 0x1ec   :  { %288 = vrcp.f32 %v199_v26 }
 0x1f6   :  { %v289_v27 = vpop.eup %288 }
 0x1f7   :  { %202 = vst [vmem:[#allocation6] sm:$0xff] %v289_v27 }
 0x1f8   :  { %323 = shalt.err (!%p320_p12)
}
 0x1f9   :  { %s324_s5 = scalar_lea.hbm %s397_s3, 128 }
 0x1fa   :  { %p325_p13 = scmp.ne.s32.totalorder %s397_s3, %s324_s5  ;;  %p328_p0 = scmp.lt.u32.totalorder %s324_s5, %s397_s3 }
 0x1fc   :  { %p330_p1 = pnand %p328_p0, %p325_p13 }
 0x1fe   :  { %333 = shalt.err (!%p330_p1)
}
 0x1ff   :  { %212 = dma.vmem_to_hbm [thread:$0]  %s210_s1, 128, %s397_s3, [#allocation5]  }
 0x200   :  { %336 = dma.done.wait [#allocation5], 128  }
 0x201   :  { %337 = vsyncadd [#allocation5], 4294967168 }
 0x202   :  { %216 = vsyncpa [#allocation4], 1 }
 0x203   :  { %217 = vsyncpa [#allocation5], 1 }

</bundles_post_ra>
